<compile_context>
chip_gen: v7x
topology: tpu7x:2x2x1
jax: 0.10.0
libtpu: 0.0.40
codegen_flags: <defaults>
</compile_context>

<pallas_src>
import functools

import jax
import jax.numpy as jnp
from jax.experimental import pallas as pl
from jax.experimental.pallas import tpu as pltpu


def _round_up(n, m):
    return ((n + m - 1) // m) * m


def _interaction_agg_kernel(x_ref, y_ref, wxa_ref, wy_ref, b_ref, e_ref,
                            s_ref, o_ref, *, o_pad):
    x = x_ref[...]                                   # (TB, x_dim) f32
    y = y_ref[...]                                   # (TB, y_dim) f32

    # Fused matmul on x: cols [0, o_pad) = linear weights (zero-padded),
    # cols [o_pad, o_pad+m_pad) = block-diagonal bilinear projection
    #   t[b, o_pad + (h*O+o)*Dy + j] = sum_i x[b, h*Dx+i] * W_eff[h, i, o, j]
    t = jnp.dot(x, wxa_ref[...], preferred_element_type=jnp.float32)

    # Linear part (lane-dense, O padded to 128).
    lin = (t[:, :o_pad]
           + jnp.dot(y, wy_ref[...], preferred_element_type=jnp.float32)
           + b_ref[...])                             # (TB, O_pad)

    proj = t[:, o_pad:]                              # (TB, M_pad)
    # ytile[b, (h*O+o)*Dy + j] = y[b, h*Dy + j]   (0/1 expansion matmul)
    ytile = jnp.dot(y, e_ref[...], preferred_element_type=jnp.float32)
    # Sum each (h, j) group into its output column (0/1 selection matmul).
    bil = jnp.dot(proj * ytile, s_ref[...],
                  preferred_element_type=jnp.float32)  # (TB, O_pad)

    # Single lane-dense store of the whole block.
    o_ref[...] = (lin + bil).astype(o_ref.dtype)


def interaction_aggregation(x, y, params, *, num_heads, output_dim):
    B, x_dim = x.shape
    _, y_dim = y.shape
    H, O = num_heads, output_dim
    Dx = x_dim // H
    Dy = y_dim // H

    f32 = jnp.float32
    M = H * O * Dy                      # bilinear intermediate width
    O_pad = _round_up(O, 128)           # lane-dense output width
    M_pad = _round_up(M, 128)           # lane-dense intermediate width
    N = O_pad + M_pad

    # ---- weight prep (plain JAX, trace-time only) ----------------------
    # W_eff[h, i, o, j] reproduces the PyTorch view() index arithmetic of w_xy.
    W_eff = params["w_xy"].reshape(H, Dx, O, Dy)
    Wh = W_eff.reshape(H, Dx, O * Dy)                       # (H, Dx, O*Dy)

    eye_h = jnp.eye(H, dtype=f32)
    # Block-diagonal over heads: (x_dim, M),
    #   W_bx[h*Dx+i, (h*O+o)*Dy+j] = W_eff[h, i, o, j]
    W_bx = (eye_h[:, None, :, None] * Wh[:, :, None, :]).reshape(x_dim, M)

    # Expansion E: (y_dim, M), E[h*Dy+j, (h*O+o)*Dy+j] = 1
    eye_dy = jnp.eye(Dy, dtype=f32)
    E = jnp.broadcast_to(
        eye_h[:, None, :, None, None] * eye_dy[None, :, None, None, :],
        (H, Dy, H, O, Dy)).reshape(y_dim, M)

    # Selection S: (M, O), S[(h*O+o)*Dy+j, o] = 1
    eye_o = jnp.eye(O, dtype=f32)
    S = jnp.broadcast_to(eye_o[None, :, None, :], (H, O, Dy, O)).reshape(M, O)

    # Fused x-side weight: linear columns + bilinear projection columns.
    WxA = jnp.zeros((x_dim, N), f32)
    WxA = WxA.at[:, :O].set(params["w_x_weight"].T.astype(f32))
    WxA = WxA.at[:, O_pad:O_pad + M].set(W_bx)

    WyA = jnp.zeros((y_dim, O_pad), f32).at[:, :O].set(
        params["w_y_weight"].T.astype(f32))
    bias = jnp.zeros((1, O_pad), f32).at[:, :O].set(
        (params["w_x_bias"] + params["w_y_bias"]).reshape(1, O).astype(f32))

    E_pad = jnp.zeros((y_dim, M_pad), f32).at[:, :M].set(E)
    S_pad = jnp.zeros((M_pad, O_pad), f32).at[:M, :O].set(S)

    # ---- batch tiling (pad B, big tiles, cdiv grid) ---------------------
    if B <= 512:
        TB = _round_up(B, 8)
        B_pad = TB
    else:
        TB = 512
        B_pad = _round_up(B, TB)
    if B_pad != B:
        pad = B_pad - B
        x = jnp.pad(x, ((0, pad), (0, 0)))
        y = jnp.pad(y, ((0, pad), (0, 0)))
    grid = (B_pad // TB,)

    kernel = functools.partial(_interaction_agg_kernel, o_pad=O_pad)

    out = pl.pallas_call(
        kernel,
        out_shape=jax.ShapeDtypeStruct((B_pad, O_pad), jnp.float32),
        grid=grid,
        in_specs=[
            pl.BlockSpec((TB, x_dim), lambda i: (i, 0)),
            pl.BlockSpec((TB, y_dim), lambda i: (i, 0)),
            pl.BlockSpec((x_dim, N), lambda i: (0, 0)),
            pl.BlockSpec((y_dim, O_pad), lambda i: (0, 0)),
            pl.BlockSpec((1, O_pad), lambda i: (0, 0)),
            pl.BlockSpec((y_dim, M_pad), lambda i: (0, 0)),
            pl.BlockSpec((M_pad, O_pad), lambda i: (0, 0)),
        ],
        out_specs=pl.BlockSpec((TB, O_pad), lambda i: (i, 0)),
        compiler_params=pltpu.CompilerParams(
            dimension_semantics=("parallel",)),
    )(x, y, WxA, WyA, bias, E_pad, S_pad)

    return out[:B, :O]


def reference(x, y, params, *, num_heads, output_dim):
    """Direct transcription of the PyTorch forward (pure JAX)."""
    Dx = x.shape[1] // num_heads
    Dy = y.shape[1] // num_heads
    out = x @ params["w_x_weight"].T + params["w_x_bias"]
    out = out + y @ params["w_y_weight"].T + params["w_y_bias"]
    head_x = x.reshape(-1, num_heads, Dx)
    head_y = y.reshape(-1, num_heads, Dy)
    w3 = params["w_xy"].reshape(num_heads, Dx, -1)
    t = jnp.matmul(head_x[:, :, None, :], w3)              # (B, H, 1, Dy*O)
    t = t.reshape(-1, num_heads, output_dim, Dy)            # (B, H, O, Dy)
    xy = jnp.matmul(t, head_y[:, :, :, None])[..., 0]       # (B, H, O)
    return out + xy.sum(axis=1)


def _make_params(key, x_dim, y_dim, num_heads, output_dim):
    k1, k2, k3, k4, k5 = jax.random.split(key, 5)
    Dx, Dy = x_dim // num_heads, y_dim // num_heads
    return {
        "w_x_weight": jax.random.normal(k1, (output_dim, x_dim), jnp.float32)
                      * jnp.sqrt(2.0 / (x_dim + output_dim)),
        "w_x_bias":   jax.random.normal(k2, (output_dim,), jnp.float32) * 0.1,
        "w_y_weight": jax.random.normal(k3, (output_dim, y_dim), jnp.float32)
                      * jnp.sqrt(2.0 / (y_dim + output_dim)),
        "w_y_bias":   jax.random.normal(k4, (output_dim,), jnp.float32) * 0.1,
        "w_xy":       jax.random.normal(k5, (num_heads * Dx * Dy, output_dim),
                                        jnp.float32)
                      * jnp.sqrt(2.0 / (num_heads * Dx * Dy + output_dim)),
    }


if __name__ == "__main__":
    key = jax.random.PRNGKey(0)

    # Config 1: matches the module's constructor defaults at small scale.
    k_p, k_x, k_y, key = jax.random.split(key, 4)
    B, x_dim, y_dim, H, O = 8, 32, 16, 4, 3
    params = _make_params(k_p, x_dim, y_dim, H, O)
    x = jax.random.normal(k_x, (B, x_dim), jnp.float32)
    y = jax.random.normal(k_y, (B, y_dim), jnp.float32)
    out = jax.block_until_ready(
        interaction_aggregation(x, y, params, num_heads=H, output_dim=O))
    ref = reference(x, y, params, num_heads=H, output_dim=O)
    assert out.shape == (B, O)
    assert jnp.allclose(out, ref, atol=1e-5, rtol=1e-5), (out, ref)

    # Config 2: batch not a multiple of 8 (exercises padding path), O = 1.
    k_p, k_x, k_y, key = jax.random.split(key, 4)
    B, x_dim, y_dim, H, O = 6, 24, 8, 2, 1
    params = _make_params(k_p, x_dim, y_dim, H, O)
    x = jax.random.normal(k_x, (B, x_dim), jnp.float32)
    y = jax.random.normal(k_y, (B, y_dim), jnp.float32)
    out = jax.block_until_ready(
        interaction_aggregation(x, y, params, num_heads=H, output_dim=O))
    ref = reference(x, y, params, num_heads=H, output_dim=O)
    assert out.shape == (B, O)
    assert jnp.allclose(out, ref, atol=1e-5, rtol=1e-5), (out, ref)

    print("KERNEL_OK")
</pallas_src>

<mosaic_0001>
module attributes {stable_mosaic.version = 11 : i64} {
  func.func @_interaction_agg_kernel(%arg0: i32, %arg1: memref<8x32xf32, #tpu.memory_space<vmem>>, %arg2: memref<8x16xf32, #tpu.memory_space<vmem>>, %arg3: memref<32x256xf32, #tpu.memory_space<vmem>>, %arg4: memref<16x128xf32, #tpu.memory_space<vmem>>, %arg5: memref<1x128xf32, #tpu.memory_space<vmem>>, %arg6: memref<16x128xf32, #tpu.memory_space<vmem>>, %arg7: memref<128x128xf32, #tpu.memory_space<vmem>>, %arg8: memref<8x128xf32, #tpu.memory_space<vmem>>) attributes {dimension_semantics = [#tpu.dimension_semantics<parallel>], iteration_bounds = array<i64: 1>, scalar_prefetch = 0 : i64, scratch_operands = 0 : i64, tpu.core_type = #tpu.core_type<tc>, window_params = [{transform_indices = @transform_0, window_bounds = array<i64: 8, 32>}, {transform_indices = @transform_1, window_bounds = array<i64: 8, 16>}, {pipeline_mode = #tpu.pipeline_mode<synchronous>, transform_indices = @transform_2, window_bounds = array<i64: 32, 256>}, {pipeline_mode = #tpu.pipeline_mode<synchronous>, transform_indices = @transform_3, window_bounds = array<i64: 16, 128>}, {pipeline_mode = #tpu.pipeline_mode<synchronous>, transform_indices = @transform_4, window_bounds = array<i64: 1, 128>}, {pipeline_mode = #tpu.pipeline_mode<synchronous>, transform_indices = @transform_5, window_bounds = array<i64: 16, 128>}, {pipeline_mode = #tpu.pipeline_mode<synchronous>, transform_indices = @transform_6, window_bounds = array<i64: 128, 128>}, {transform_indices = @transform_7, window_bounds = array<i64: 8, 128>}]} {
    %c0 = arith.constant 0 : index
    %c0_0 = arith.constant 0 : index
    %0 = vector.load %arg1[%c0, %c0_0] : memref<8x32xf32, #tpu.memory_space<vmem>>, vector<8x32xf32>
    %c0_1 = arith.constant 0 : index
    %c0_2 = arith.constant 0 : index
    %1 = vector.load %arg2[%c0_1, %c0_2] : memref<8x16xf32, #tpu.memory_space<vmem>>, vector<8x16xf32>
    %c0_3 = arith.constant 0 : index
    %c0_4 = arith.constant 0 : index
    %2 = vector.load %arg3[%c0_3, %c0_4] : memref<32x256xf32, #tpu.memory_space<vmem>>, vector<32x256xf32>
    %cst = arith.constant dense<0.000000e+00> : vector<8x256xf32>
    %3 = tpu.matmul %0, %2, %cst {dimension_numbers = #tpu.dot_dimension_numbers<[1], [0], [0], [1], [0, 0, 1, 1], [], []>} : vector<8x32xf32>, vector<32x256xf32>, vector<8x256xf32> -> vector<8x256xf32>
    %4 = vector.extract_strided_slice %3 {offsets = [0, 0], sizes = [8, 128], strides = [1, 1]} : vector<8x256xf32> to vector<8x128xf32>
    %c0_5 = arith.constant 0 : index
    %c0_6 = arith.constant 0 : index
    %5 = vector.load %arg4[%c0_5, %c0_6] : memref<16x128xf32, #tpu.memory_space<vmem>>, vector<16x128xf32>
    %cst_7 = arith.constant dense<0.000000e+00> : vector<8x128xf32>
    %6 = tpu.matmul %1, %5, %cst_7 {dimension_numbers = #tpu.dot_dimension_numbers<[1], [0], [0], [1], [0, 0, 1, 1], [], []>} : vector<8x16xf32>, vector<16x128xf32>, vector<8x128xf32> -> vector<8x128xf32>
    %7 = arith.addf %4, %6 : vector<8x128xf32>
    %c0_8 = arith.constant 0 : index
    %c0_9 = arith.constant 0 : index
    %8 = vector.load %arg5[%c0_8, %c0_9] : memref<1x128xf32, #tpu.memory_space<vmem>>, vector<1x128xf32>
    %9 = vector.broadcast %8 : vector<1x128xf32> to vector<8x128xf32>
    %10 = arith.addf %7, %9 : vector<8x128xf32>
    %11 = vector.extract_strided_slice %3 {offsets = [0, 128], sizes = [8, 128], strides = [1, 1]} : vector<8x256xf32> to vector<8x128xf32>
    %c0_10 = arith.constant 0 : index
    %c0_11 = arith.constant 0 : index
    %12 = vector.load %arg6[%c0_10, %c0_11] : memref<16x128xf32, #tpu.memory_space<vmem>>, vector<16x128xf32>
    %cst_12 = arith.constant dense<0.000000e+00> : vector<8x128xf32>
    %13 = tpu.matmul %1, %12, %cst_12 {dimension_numbers = #tpu.dot_dimension_numbers<[1], [0], [0], [1], [0, 0, 1, 1], [], []>} : vector<8x16xf32>, vector<16x128xf32>, vector<8x128xf32> -> vector<8x128xf32>
    %14 = arith.mulf %11, %13 : vector<8x128xf32>
    %c0_13 = arith.constant 0 : index
    %c0_14 = arith.constant 0 : index
    %15 = vector.load %arg7[%c0_13, %c0_14] : memref<128x128xf32, #tpu.memory_space<vmem>>, vector<128x128xf32>
    %cst_15 = arith.constant dense<0.000000e+00> : vector<8x128xf32>
    %16 = tpu.matmul %14, %15, %cst_15 {dimension_numbers = #tpu.dot_dimension_numbers<[1], [0], [0], [1], [0, 0, 1, 1], [], []>} : vector<8x128xf32>, vector<128x128xf32>, vector<8x128xf32> -> vector<8x128xf32>
    %17 = arith.addf %10, %16 : vector<8x128xf32>
    %c0_16 = arith.constant 0 : index
    %c0_17 = arith.constant 0 : index
    %18 = vector.load %arg8[%c0_16, %c0_17] : memref<8x128xf32, #tpu.memory_space<vmem>>, vector<8x128xf32>
    tpu.vector_store %arg8[%c0_16, %c0_17], %17 {strides = array<i32>} : memref<8x128xf32, #tpu.memory_space<vmem>>, vector<8x128xf32>,
    return
  }
  func.func @transform_0(%arg0: i32) -> (i32, i32) {
    %c0_i32 = arith.constant 0 : i32
    %c0_i32_0 = arith.constant 0 : i32
    return %arg0, %c0_i32 : i32, i32
  }
  func.func @transform_1(%arg0: i32) -> (i32, i32) {
    %c0_i32 = arith.constant 0 : i32
    %c0_i32_0 = arith.constant 0 : i32
    return %arg0, %c0_i32 : i32, i32
  }
  func.func @transform_2(%arg0: i32) -> (i32, i32) {
    %c0_i32 = arith.constant 0 : i32
    %c0_i32_0 = arith.constant 0 : i32
    %c0_i32_1 = arith.constant 0 : i32
    return %c0_i32, %c0_i32_0 : i32, i32
  }
  func.func @transform_3(%arg0: i32) -> (i32, i32) {
    %c0_i32 = arith.constant 0 : i32
    %c0_i32_0 = arith.constant 0 : i32
    %c0_i32_1 = arith.constant 0 : i32
    return %c0_i32, %c0_i32_0 : i32, i32
  }
  func.func @transform_4(%arg0: i32) -> (i32, i32) {
    %c0_i32 = arith.constant 0 : i32
    %c0_i32_0 = arith.constant 0 : i32
    %c0_i32_1 = arith.constant 0 : i32
    return %c0_i32, %c0_i32_0 : i32, i32
  }
  func.func @transform_5(%arg0: i32) -> (i32, i32) {
    %c0_i32 = arith.constant 0 : i32
    %c0_i32_0 = arith.constant 0 : i32
    %c0_i32_1 = arith.constant 0 : i32
    return %c0_i32, %c0_i32_0 : i32, i32
  }
  func.func @transform_6(%arg0: i32) -> (i32, i32) {
    %c0_i32 = arith.constant 0 : i32
    %c0_i32_0 = arith.constant 0 : i32
    %c0_i32_1 = arith.constant 0 : i32
    return %c0_i32, %c0_i32_0 : i32, i32
  }
  func.func @transform_7(%arg0: i32) -> (i32, i32) {
    %c0_i32 = arith.constant 0 : i32
    %c0_i32_0 = arith.constant 0 : i32
    return %arg0, %c0_i32 : i32, i32
  }
}

</mosaic_0001>

<bundles_post_ra>
// kernel: tpu_custom_call.1
= control target key start
LH: loop header
LB: loop body
LE: loop exit
PB: predicated region body
PF: predicated region fallthrough
CT: control target
= control target key end

     0   :  { %12 = vsyncpa [#allocation3], 0  ;;  %s875_s0 = inlined_call_operand.hbm [shape: f32[8,32], index: 0, kind: input, shape index: {}]   ;;  %s876_s1 = inlined_call_operand.hbm [shape: f32[8,16], index: 1, kind: input, shape index: {}]   ;;  %s877_s2 = inlined_call_operand.hbm [shape: f32[32,256], index: 2, kind: input, shape index: {}]   ;;  %s878_s3 = inlined_call_operand.hbm [shape: f32[16,128], index: 3, kind: input, shape index: {}]   ;;  %s879_s4 = inlined_call_operand.vmem [shape: f32[1,128], index: 4, kind: input, shape index: {}]   ;;  %s880_s5 = inlined_call_operand.vmem [shape: f32[16,128], index: 5, kind: input, shape index: {}]   ;;  %s881_s6 = inlined_call_operand.hbm [shape: f32[128,128], index: 6, kind: input, shape index: {}]   ;;  %s882_s7 = inlined_call_operand.hbm [shape: f32[8,128], index: 7, kind: output, shape index: {}]  }
   0x1   :  { %13 = vsyncpa [#allocation6], 0 }
   0x2   :  { %14 = vsyncpa [#allocation9], 0 }
   0x3   :  { %15 = vsyncpa [#allocation4], 0  ;;  %s706_s24 = smov [#allocation5]   ;;  %s707_s26 = smov [#allocation8]  }
   0x4   :  { %s32_s25 = sshll.u32 %s706_s24, 4  ;;  %s53_s27 = sshll.u32 %s707_s26, 4  ;;  %s33_s25 = int_to_ptr.vmem [resolvable:$true] %s32_s25  ;;  %s759_s27 = int_to_ptr.vmem [resolvable:$true] %s53_s27 }
   0x5   :  { %s566_s30 = scalar_lea.hbm %s876_s1, 128 }
   0x6   :  { %p567_p0 = scmp.ne.s32.totalorder %s876_s1, %s566_s30  ;;  %p570_p1 = scmp.lt.u32.totalorder %s566_s30, %s876_s1 }
   0x8   :  { %p572_p2 = pnand %p570_p1, %p567_p0 }
   0xa   :  { %575 = shalt.err (!%p572_p2)
}
   0xb   :  { %s576_s12 = scalar_lea.vmem %s33_s25, 128  ;;  %p581_p4 = scmp.lt.s32.totalorder %s33_s25, %s33_s25 }
   0xc   :  { %p577_p3 = scmp.ne.s32.totalorder %s33_s25, %s576_s12  ;;  %p582_p5 = scmp.lt.s32.totalorder %s576_s12, %s576_s12 }
   0xe   :  { %p583_p6 = por %p582_p5, %p581_p4 }
  0x10   :  { %p584_p7 = pnand %p583_p6, %p577_p3 }
  0x12   :  { %587 = shalt.err (!%p584_p7)
}
  0x13   :  { %35 = dma.hbm_to_vmem [thread:$0]  %s876_s1, 128, %s33_s25, [#allocation6]  }
  0x14   :  { %s588_s17 = scalar_lea.hbm %s878_s3, 256 }
  0x15   :  { %p589_p8 = scmp.ne.s32.totalorder %s878_s3, %s588_s17  ;;  %p592_p9 = scmp.lt.u32.totalorder %s588_s17, %s878_s3 }
  0x17   :  { %p594_p10 = pnand %p592_p9, %p589_p8 }
  0x19   :  { %597 = shalt.err (!%p594_p10)
}
  0x1a   :  { %s598_s22 = scalar_lea.vmem %s759_s27, 256  ;;  %p603_p12 = scmp.lt.s32.totalorder %s759_s27, %s759_s27 }
  0x1b   :  { %p599_p11 = scmp.ne.s32.totalorder %s759_s27, %s598_s22  ;;  %p604_p13 = scmp.lt.s32.totalorder %s598_s22, %s598_s22 }
  0x1d   :  { %p605_p0 = por %p604_p13, %p603_p12 }
  0x1f   :  { %p606_p1 = pnand %p605_p0, %p599_p11 }
  0x21   :  { %609 = shalt.err (!%p606_p1)
}
  0x22   :  { %s708_s1 = smov 128   ;;  %s709_s23 = smov 8  }
  0x23   :  { %59 = dma.hbm_to_vmem [thread:$0]  %s878_s3, 256, %s759_s27, [#allocation9], %s708_s1, %s708_s1, %s709_s23  }
  0x24   :  { %s710_s26 = smov [#allocation2]   ;;  %s711_s29 = smov [#allocation7]  }
  0x25   :  { %s22_s28 = sshll.u32 %s710_s26, 4  ;;  %s41_s30 = sshll.u32 %s711_s29, 4  ;;  %s23_s28 = int_to_ptr.vmem [resolvable:$true] %s22_s28  ;;  %s793_s30 = int_to_ptr.vmem [resolvable:$true] %s41_s30 }
  0x26   :  { %s610_s10 = scalar_lea.hbm %s875_s0, 128 }
  0x27   :  { %p611_p2 = scmp.ne.s32.totalorder %s875_s0, %s610_s10  ;;  %p614_p3 = scmp.lt.u32.totalorder %s610_s10, %s875_s0 }
  0x29   :  { %p616_p4 = pnand %p614_p3, %p611_p2 }
  0x2b   :  { %619 = shalt.err (!%p616_p4)
}
  0x2c   :  { %s620_s3 = scalar_lea.vmem %s23_s28, 128  ;;  %p625_p6 = scmp.lt.s32.totalorder %s23_s28, %s23_s28 }
  0x2d   :  { %p621_p5 = scmp.ne.s32.totalorder %s23_s28, %s620_s3  ;;  %p626_p7 = scmp.lt.s32.totalorder %s620_s3, %s620_s3 }
  0x2f   :  { %p627_p8 = por %p626_p7, %p625_p6 }
  0x31   :  { %p628_p9 = pnand %p627_p8, %p621_p5 }
  0x33   :  { %631 = shalt.err (!%p628_p9)
}
  0x34   :  { %25 = dma.hbm_to_vmem [thread:$0]  %s875_s0, 128, %s23_s28, [#allocation3]  }
  0x35   :  { %s632_s18 = scalar_lea.hbm %s877_s2, 1024 }
  0x36   :  { %p633_p10 = scmp.ne.s32.totalorder %s877_s2, %s632_s18  ;;  %p636_p11 = scmp.lt.u32.totalorder %s632_s18, %s877_s2 }
  0x38   :  { %p638_p12 = pnand %p636_p11, %p633_p10 }
  0x3a   :  { %641 = shalt.err (!%p638_p12)
}
  0x3b   :  { %s642_s24 = scalar_lea.vmem %s793_s30, 1024  ;;  %p647_p0 = scmp.lt.s32.totalorder %s793_s30, %s793_s30 }
  0x3c   :  { %p643_p13 = scmp.ne.s32.totalorder %s793_s30, %s642_s24  ;;  %p648_p1 = scmp.lt.s32.totalorder %s642_s24, %s642_s24 }
  0x3e   :  { %p649_p2 = por %p648_p1, %p647_p0 }
  0x40   :  { %p650_p3 = pnand %p649_p2, %p643_p13 }
  0x42   :  { %653 = shalt.err (!%p650_p3)
}
  0x43   :  { %s712_s0 = smov 256   ;;  %s713_s25 = smov 16  }
  0x44   :  { %47 = dma.hbm_to_vmem [thread:$0]  %s877_s2, 1024, %s793_s30, [#allocation6], %s712_s0, %s712_s0, %s713_s25  }
  0x45   :  { %s714_s29 = smov [#allocation10]   ;;  %s654_s11 = scalar_lea.hbm %s881_s6, 2048 }
  0x46   :  { %s69_s8 = sshll.u32 %s714_s29, 4  ;;  %p655_p4 = scmp.ne.s32.totalorder %s881_s6, %s654_s11  ;;  %s70_s8 = int_to_ptr.vmem [resolvable:$true] %s69_s8 }
  0x47   :  { %p658_p5 = scmp.lt.u32.totalorder %s654_s11, %s881_s6 }
  0x49   :  { %p660_p6 = pnand %p658_p5, %p655_p4 }
  0x4b   :  { %663 = shalt.err (!%p660_p6)
}
  0x4c   :  { %s664_s27 = scalar_lea.vmem %s70_s8, 2048  ;;  %p669_p8 = scmp.lt.s32.totalorder %s70_s8, %s70_s8 }
  0x4d   :  { %p665_p7 = scmp.ne.s32.totalorder %s70_s8, %s664_s27  ;;  %p670_p9 = scmp.lt.s32.totalorder %s664_s27, %s664_s27 }
  0x4f   :  { %p671_p10 = por %p670_p9, %p669_p8 }
  0x51   :  { %p672_p11 = pnand %p671_p10, %p665_p7 }
  0x53   :  { %675 = shalt.err (!%p672_p11)
}
  0x54   :  { %75 = dma.hbm_to_vmem [thread:$0]  %s881_s6, 2048, %s70_s8, [#allocation9], %s708_s1, %s708_s1, %s709_s23  }
  0x55   :  { %698 = dma.done.wait [#allocation3], 128  }
  0x56   :  { %699 = vsyncadd [#allocation3], 4294967168 }
  0x57   :  { %700 = dma.done.wait [#allocation6], 1152  }
  0x58   :  { %701 = vsyncadd [#allocation6], 4294966144 }
  0x59   :  { %702 = dma.done.wait [#allocation9], 2304  }
  0x5a   :  { %703 = vsyncadd [#allocation9], 4294964992  ;;  %v715_v0 = vmov 0.0   ;;  %v716_v1 = vmov 0.0|0.0   ;;  %vm717_vm0 = vmmov 0   ;;  %v94_v2 = vld [vmem:[#allocation7 + $0x8] sm:$0xff] }
  0x5b   :  { %169 = vmatprep.mubr.f32.mxu1 %v715_v0  ;;  %529 = vmatprep.subr.bf16.mxu0 %v716_v1  ;;  %v96_v3 = vld [vmem:[#allocation7 + $0x18] sm:$0xff]  ;;  %v93_v4 = vld [vmem:[#allocation7] sm:$0xff]  ;;  %v95_v6 = vld [vmem:[#allocation7 + $0x10] sm:$0xff]  ;;  %vm101_vm1 = vcmask 261120   ;;  %vm178_vm2 = vcmask 130048   ;;  %s718_s17 = smov [#allocation11]  }
  0x5c   :  { %512 = vmatprep.mubr.msk.f32.mxu0 %vm717_vm0, %v715_v0  ;;  %v515_v5 = vpack.c.bf16 %v96_v3, %v94_v2  ;;  %v98_v7 = vld [vmem:[#allocation7 + $0x28] sm:$0xff]  ;;  %v100_v8 = vld [vmem:[#allocation7 + $0x38] sm:$0xff]  ;;  %v517_v9 = vpack.c.bf16 %v95_v6, %v93_v4  ;;  %v97_v11 = vld [vmem:[#allocation7 + $0x20] sm:$0xff]  ;;  %s428_s18 = sshll.u32 %s718_s17, 4  ;;  %s429_s18 = int_to_ptr.vmem [resolvable:$true] %s428_s18 }
  0x5d   :  { %v519_v10 = vpack.c.bf16 %v100_v8, %v98_v7  ;;  %v99_v12 = vld [vmem:[#allocation7 + $0x30] sm:$0xff]  ;;  %v176_v15 = vld [vmem:[#allocation8] sm:$0xff]  ;;  %v177_v16 = vld [vmem:[#allocation8 + $0x8] sm:$0xff]  ;;  %s676_s19 = scalar_lea.vmem %s429_s18, 128  ;;  %p681_p13 = scmp.lt.s32.totalorder %s429_s18, %s429_s18 }
  0x5e   :  { %516 = vmatprep.subr.bf16.mxu1 %v515_v5  ;;  %v521_v13 = vpack.c.bf16 %v99_v12, %v97_v11  ;;  %v334_v14 = vld [vmem:[#allocation10] sm:$0xff]  ;;  %v335_v17 = vld [vmem:[#allocation10 + $0x8] sm:$0xff]  ;;  %v336_v19 = vld [vmem:[#allocation10 + $0x10] sm:$0xff]  ;;  %v524_v22 = vpack.c.bf16 %v177_v16, %v176_v15  ;;  %p677_p12 = scmp.ne.s32.totalorder %s429_s18, %s676_s19  ;;  %p682_p0 = scmp.lt.s32.totalorder %s676_s19, %s676_s19 }
  0x5f   :  { %518 = vmatpush1.bf16.msra.mxu1 %v517_v9  ;;  %v530_v18 = vpack.c.bf16 %v335_v17, %v334_v14  ;;  %v337_v20 = vld [vmem:[#allocation10 + $0x18] sm:$0xff]  ;;  %v91_v21 = vld [vmem:[#allocation2] sm:$0xff]  ;;  %v261_v23 = vld [vmem:[%s880_s5] sm:$0xff] }
  0x60   :  { %520 = vmatprep.subr.bf16.mxu1 %v519_v10  ;;  %v262_v24 = vld [vmem:[%s880_s5 + $0x8] sm:$0xff]  ;;  %v533_v25 = vpack.c.bf16 %v337_v20, %v336_v19  ;;  %v338_v26 = vld [vmem:[#allocation10 + $0x20] sm:$0xff]  ;;  %v339_v27 = vld [vmem:[#allocation10 + $0x28] sm:$0xff]  ;;  %p683_p1 = por %p682_p0, %p681_p13 }
  0x61   :  { %531 = vmatpush3.bf16.msra.mxu0 %v530_v18  ;;  %v92_v28 = vld [vmem:[#allocation5] sm:$0xff]  ;;  %v527_v29 = vpack.c.bf16 %v262_v24, %v261_v23  ;;  %v536_v30 = vpack.c.bf16 %v339_v27, %v338_v26  ;;  %v340_v31 = vld [vmem:[#allocation10 + $0x30] sm:$0xff]  ;;  %v341_v32 = vld [vmem:[#allocation10 + $0x38] sm:$0xff] }
  0x62   :  { %532 = vmatprep.subr.bf16.mxu0 %v716_v1  ;;  %v539_v33 = vpack.c.bf16 %v341_v32, %v340_v31  ;;  %v342_v34 = vld [vmem:[#allocation10 + $0x40] sm:$0xff]  ;;  %v343_v35 = vld [vmem:[#allocation10 + $0x48] sm:$0xff]  ;;  %v344_v37 = vld [vmem:[#allocation10 + $0x50] sm:$0xff]  ;;  %p684_p2 = pnand %p683_p1, %p677_p12 }
  0x63   :  { %522 = vmatpush1.bf16.msra.mxu1 %v521_v13  ;;  %v542_v36 = vpack.c.bf16 %v343_v35, %v342_v34  ;;  %v345_v38 = vld [vmem:[#allocation10 + $0x58] sm:$0xff]  ;;  %v346_v40 = vld [vmem:[#allocation10 + $0x60] sm:$0xff]  ;;  %v347_v41 = vld [vmem:[#allocation10 + $0x68] sm:$0xff] }
  0x64   :  { %523 = vmatprep.subr.bf16.mxu1 %v716_v1  ;;  %v545_v39 = vpack.c.bf16 %v345_v38, %v344_v37  ;;  %v548_v42 = vpack.c.bf16 %v347_v41, %v346_v40  ;;  %v348_v43 = vld [vmem:[#allocation10 + $0x70] sm:$0xff]  ;;  %v349_v44 = vld [vmem:[#allocation10 + $0x78] sm:$0xff] }
  0x65   :  { %534 = vmatpush3.bf16.msra.mxu0 %v533_v25  ;;  %v551_v45 = vpack.c.bf16 %v349_v44, %v348_v43  ;;  %v441_v54 = vld [vmem:[%s879_s4] ss:$0 sm:$0xff] }
  0x66   :  { %439 = vmatmul.mubr.msk.f32.vlgmr.msra.gmra.mrb[0].mxu1 %vm101_vm1, %v91_v21  ;;  %535 = vmatprep.subr.bf16.mxu0 %v716_v1 }
  0x67   :  { %525 = vmatpush3.bf16.msra.mxu1 %v524_v22  ;;  %470 = vmatprep.mubr.msk.f32.mxu1 %vm717_vm0, %v715_v0 }
  0x68   :  { %526 = vmatprep.subr.bf16.mxu1 %v716_v1 }
  0x69   :  { %537 = vmatpush3.bf16.msra.mxu0 %v536_v30 }
  0x6a   :  { %471 = vmatmul.mubr.msk.f32.vlgmr.msra.gmra.mrb[2].mxu1 %vm178_vm2, %v92_v28  ;;  %538 = vmatprep.subr.bf16.mxu0 %v716_v1 }
  0x6b   :  { %528 = vmatpush3.bf16.msra.mxu1 %v527_v29  ;;  %477 = vmatprep.mubr.msk.f32.mxu1 %vm717_vm0, %v715_v0 }
  0x6d   :  { %540 = vmatpush3.bf16.msra.mxu0 %v539_v33 }
  0x6e   :  { %478 = vmatmul.mubr.msk.f32.vlgmr.msra.gmra.mrb[4].mxu1 %vm178_vm2, %v92_v28  ;;  %541 = vmatprep.subr.bf16.mxu0 %v716_v1 }
  0x71   :  { %543 = vmatpush3.bf16.msra.mxu0 %v542_v36 }
  0x72   :  { %544 = vmatprep.subr.bf16.mxu0 %v716_v1 }
  0x75   :  { %546 = vmatpush3.bf16.msra.mxu0 %v545_v39 }
  0x76   :  { %547 = vmatprep.subr.bf16.mxu0 %v716_v1 }
  0x79   :  { %549 = vmatpush3.bf16.msra.mxu0 %v548_v42 }
  0x7a   :  { %550 = vmatprep.subr.bf16.mxu0 %v716_v1 }
  0x7d   :  { %552 = vmatpush3.bf16.msra.mxu0 %v551_v45 }
 0x139   :  { %v171_v46 = vpop.f32.mrb[0].mxu1 }
 0x13a   :  { %v173_v47 = vpop.f32.mrb[1].mxu1 }
 0x13d   :  { %v248_v48 = vpop.f32.mrb[2].mxu1 }
 0x13e   :  { %v252_v49 = vadd.f32 %v248_v48, %v171_v46  ;;  %v472_v50 = vpop.f32.mrb[3].mxu1 }
 0x140   :  { %v260_v55 = vadd.f32 %v441_v54, %v252_v49 }
 0x141   :  { %v329_v51 = vpop.f32.mrb[4].mxu1 }
 0x142   :  { %v333_v52 = vmul.f32 %v329_v51, %v173_v47  ;;  %v479_v53 = vpop.f32.mrb[5].mxu1 }
 0x144   :  { %513 = vmatmul.mubr.f32.vlgmr.msra.gmra.mrb[0].mxu0 %v333_v52 }
 0x217   :  { %v416_v56 = vpop.f32.mrb[0].mxu0 }
 0x218   :  { %v420_v57 = vadd.f32 %v416_v56, %v260_v55  ;;  %v514_v58 = vpop.f32.mrb[1].mxu0 }
 0x21a   :  { %421 = vst [vmem:[#allocation11] sm:$0xff] %v420_v57 }
 0x21b   :  { %687 = shalt.err (!%p684_p2)
}
 0x21c   :  { %s688_s22 = scalar_lea.hbm %s882_s7, 128 }
 0x21d   :  { %p689_p3 = scmp.ne.s32.totalorder %s882_s7, %s688_s22  ;;  %p692_p4 = scmp.lt.u32.totalorder %s688_s22, %s882_s7 }
 0x21f   :  { %p694_p5 = pnand %p692_p4, %p689_p3 }
 0x221   :  { %697 = shalt.err (!%p694_p5)
}
 0x222   :  { %431 = dma.vmem_to_hbm [thread:$0]  %s429_s18, 128, %s882_s7, [#allocation4]  }
 0x223   :  { %704 = dma.done.wait [#allocation4], 128  }
 0x224   :  { %705 = vsyncadd [#allocation4], 4294967168 }
 0x225   :  { %435 = vsyncpa [#allocation3], 1 }
 0x226   :  { %436 = vsyncpa [#allocation6], 1 }
 0x227   :  { %437 = vsyncpa [#allocation9], 1 }
 0x228   :  { %438 = vsyncpa [#allocation4], 1 }

</bundles_post_ra>
